<compile_context>
chip_gen: v7x
topology: tpu7x:2x2x1
jax: 0.10.0
libtpu: 0.0.40
codegen_flags: <defaults>
</compile_context>

<pallas_src>
import math

import jax
import jax.numpy as jnp
from jax.experimental import pallas as pl
from jax.experimental.pallas import tpu as pltpu


def _round_up(x, m):
    return ((x + m - 1) // m) * m


# ----------------------------- Pallas kernels ------------------------------ #

def _gcn_kernel(a_ref, x_ref, w_ref, o_ref, acc_ref):
    # grid = (t, i, k); k is the reduction (column-tile of Ahat / row-tile of X).
    @pl.when(pl.program_id(2) == 0)
    def _():
        acc_ref[...] = jnp.zeros_like(acc_ref)

    # X_blk @ W in bf16 on the MXU with f32 accumulation, then A_blk @ (XW).
    xw = jnp.dot(
        x_ref[0].astype(jnp.bfloat16),
        w_ref[0].astype(jnp.bfloat16),
        preferred_element_type=jnp.float32,
    )
    acc_ref[...] += jnp.dot(
        a_ref[0], xw.astype(jnp.bfloat16), preferred_element_type=jnp.float32
    )

    @pl.when(pl.program_id(2) == pl.num_programs(2) - 1)
    def _():
        o_ref[0] = jnp.maximum(acc_ref[...], 0.0)  # activation = ReLU


def gcn_propagate(A_bf16, X, Wseq, *, tm, tk):
    """All-timestep GCN propagation.  A_bf16:[T,Np,Np] bf16, X:[T,Np,Finp] f32,
    Wseq:[T,Finp,Foutp] f32  ->  [T,Np,Foutp] f32 (padded regions stay zero)."""
    T, Np, _ = A_bf16.shape
    Finp = X.shape[-1]
    Foutp = Wseq.shape[-1]
    grid = (T, Np // tm, Np // tk)
    return pl.pallas_call(
        _gcn_kernel,
        out_shape=jax.ShapeDtypeStruct((T, Np, Foutp), jnp.float32),
        grid_spec=pltpu.PrefetchScalarGridSpec(
            num_scalar_prefetch=0,
            grid=grid,
            in_specs=[
                pl.BlockSpec((1, tm, tk), lambda t, i, k: (t, i, k)),
                pl.BlockSpec((1, tk, Finp), lambda t, i, k: (t, k, 0)),
                pl.BlockSpec((1, Finp, Foutp), lambda t, i, k: (t, 0, 0)),
            ],
            out_specs=pl.BlockSpec((1, tm, Foutp), lambda t, i, k: (t, i, 0)),
            scratch_shapes=[pltpu.VMEM((tm, Foutp), jnp.float32)],
        ),
        compiler_params=pltpu.CompilerParams(
            dimension_semantics=("parallel", "parallel", "arbitrary"),
            vmem_limit_bytes=32 * 1024 * 1024,
        ),
    )(A_bf16, X, Wseq)


def _evolve_chain_kernel(w0_ref, z_ref, wq_ref, wk_ref, wv_ref, o_ref, w_carry):
    # Sequential over t (grid axis 0, "arbitrary"): W is carried in VMEM scratch.
    @pl.when(pl.program_id(0) == 0)
    def _():
        w_carry[...] = w0_ref[...]

    w = w_carry[...]
    z = z_ref[0]
    q = jnp.dot(w, wq_ref[...], preferred_element_type=jnp.float32)
    k = jnp.dot(z, wk_ref[...], preferred_element_type=jnp.float32)
    v = jnp.dot(z, wv_ref[...], preferred_element_type=jnp.float32)
    d = jnp.float32(w.shape[1])
    # q @ k^T without an explicit transpose (contract last dims).
    s = jax.lax.dot_general(
        q, k, (((1,), (1,)), ((), ())), preferred_element_type=jnp.float32
    ) / jnp.sqrt(d)
    s_max = jnp.max(s, axis=-1, keepdims=True)
    e = jnp.exp(s - s_max)
    p = e * pl.reciprocal(jnp.sum(e, axis=-1, keepdims=True), approx=True)
    attn = jnp.dot(p, v, preferred_element_type=jnp.float32)
    w_new = jnp.tanh(w + attn)
    w_carry[...] = w_new
    o_ref[0] = w_new


def evolve_chain(W0, Zs, Wq, Wk, Wv):
    """Run the full sequential weight-evolution chain for one layer.
    W0:[Fin,Fout], Zs:[T,Fin,Fout], Wq/Wk/Wv:[Fout,Fout] -> [T,Fin,Fout]."""
    T, Fin, Fout = Zs.shape
    return pl.pallas_call(
        _evolve_chain_kernel,
        out_shape=jax.ShapeDtypeStruct((T, Fin, Fout), jnp.float32),
        grid_spec=pltpu.PrefetchScalarGridSpec(
            num_scalar_prefetch=0,
            grid=(T,),
            in_specs=[
                pl.BlockSpec((Fin, Fout), lambda t: (0, 0)),
                pl.BlockSpec((1, Fin, Fout), lambda t: (t, 0, 0)),
                pl.BlockSpec((Fout, Fout), lambda t: (0, 0)),
                pl.BlockSpec((Fout, Fout), lambda t: (0, 0)),
                pl.BlockSpec((Fout, Fout), lambda t: (0, 0)),
            ],
            out_specs=pl.BlockSpec((1, Fin, Fout), lambda t: (t, 0, 0)),
            scratch_shapes=[pltpu.VMEM((Fin, Fout), jnp.float32)],
        ),
        compiler_params=pltpu.CompilerParams(
            dimension_semantics=("arbitrary",),
        ),
    )(W0, Zs, Wq, Wk, Wv)


# ------------------------------- JAX glue ---------------------------------- #

def topk_summarize(X, mask, p, k):
    """EvolveGCN-H style summarizer: pick top-min(k,N) nodes by learned score,
    scale by tanh(score), zero-pad to k rows, transpose to weight shape [Fin, k]."""
    N, Fin = X.shape
    scores = X @ p / (jnp.linalg.norm(p) + 1e-6) + mask[:, 0]      # [N]
    kk = min(k, N)
    vals, idx = jax.lax.top_k(scores, kk)                          # [kk]
    sel = X[idx] * jnp.tanh(vals)[:, None]                         # [kk, Fin]
    if kk < k:
        sel = jnp.concatenate([sel, jnp.zeros((k - kk, Fin), X.dtype)], axis=0)
    return sel.T                                                   # [Fin, k]


def grcu_layer(A_bf16, X, mask_list, params, N, *, tm, tk):
    """One GRCU layer over all timesteps.  X: [T, Np, Finp] padded embeddings."""
    T = X.shape[0]
    Fin, Fout = params["W0"].shape
    Finp = _round_up(Fin, 128)
    Foutp = _round_up(Fout, 128)
    # Top-k node summaries (data-dependent gather) stay in plain JAX.
    Zs = jnp.stack([
        topk_summarize(X[t, :N, :Fin], mask_list[t], params["p"], Fout)
        for t in range(T)
    ])                                                              # [T, Fin, Fout]
    Wseq = evolve_chain(params["W0"], Zs, params["Wq"], params["Wk"], params["Wv"])
    Wp = jnp.pad(Wseq, ((0, 0), (0, Finp - Fin), (0, Foutp - Fout)))
    return gcn_propagate(A_bf16, X, Wp, tm=tm, tk=tk)               # [T, Np, Foutp]


def egcn_forward(A_list, Nodes_list, mask_list, layer_params, skipfeats=False):
    T, N, _ = A_list.shape
    node_feats = Nodes_list[-1]

    # Pad node count to a tile-aligned, 128-lane-dense size; pick tile size.
    Np = _round_up(N, 128)
    tile = min(512, Np)
    Np = _round_up(Np, tile)
    tm = tk = tile

    A_pad = jnp.pad(A_list, ((0, 0), (0, Np - N), (0, Np - N))).astype(jnp.bfloat16)

    Fin0 = Nodes_list[0].shape[-1]
    Finp0 = _round_up(Fin0, 128)
    X = jnp.stack(Nodes_list)                                       # [T, N, Fin0]
    X = jnp.pad(X, ((0, 0), (0, Np - N), (0, Finp0 - Fin0)))        # [T, Np, Finp0]

    for params in layer_params:
        X = grcu_layer(A_pad, X, mask_list, params, N, tm=tm, tk=tk)

    Fout_last = layer_params[-1]["W0"].shape[1]
    out = X[-1, :N, :Fout_last]
    if skipfeats:
        out = jnp.concatenate((out, node_feats), axis=1)
    return out


def init_layer_params(key, in_feats, out_feats):
    k0, k1, k2, k3, k4 = jax.random.split(key, 5)
    stdv = 1.0 / math.sqrt(out_feats)
    stdv_in = 1.0 / math.sqrt(in_feats)
    W0 = jax.random.uniform(k0, (in_feats, out_feats), jnp.float32, -stdv, stdv)
    p = jax.random.uniform(k1, (in_feats,), jnp.float32, -stdv_in, stdv_in)
    Wq = jax.random.uniform(k2, (out_feats, out_feats), jnp.float32, -stdv, stdv)
    Wk = jax.random.uniform(k3, (out_feats, out_feats), jnp.float32, -stdv, stdv)
    Wv = jax.random.uniform(k4, (out_feats, out_feats), jnp.float32, -stdv, stdv)
    return {"W0": W0, "p": p, "Wq": Wq, "Wk": Wk, "Wv": Wv}


if __name__ == "__main__":
    key = jax.random.PRNGKey(0)
    T, N = 3, 16
    feats = [8, 16, 32]  # feats_per_node, layer_1_feats, layer_2_feats

    kA, kX, kP = jax.random.split(key, 3)

    # Row-normalized symmetric adjacency per timestep (Ahat).
    A = jax.random.uniform(kA, (T, N, N), jnp.float32)
    A = 0.5 * (A + jnp.transpose(A, (0, 2, 1)))
    A = A / jnp.sum(A, axis=-1, keepdims=True)

    X0 = jax.random.normal(kX, (T, N, feats[0]), jnp.float32)
    mask = jnp.zeros((T, N, 1), jnp.float32)  # all nodes valid

    layer_keys = jax.random.split(kP, len(feats) - 1)
    layer_params = [
        init_layer_params(layer_keys[i], feats[i], feats[i + 1])
        for i in range(len(feats) - 1)
    ]

    Nodes_list = [X0[t] for t in range(T)]
    out = egcn_forward(A, Nodes_list, mask, layer_params, skipfeats=False)
    out = jax.block_until_ready(out)

    assert out.shape == (N, feats[-1]), out.shape
    assert bool(jnp.all(jnp.isfinite(out)))
    print("KERNEL_OK")
</pallas_src>

<mosaic_0001>
module attributes {stable_mosaic.version = 11 : i64} {
  func.func @_evolve_chain_kernel(%arg0: i32, %arg1: memref<8x16xf32, #tpu.memory_space<vmem>>, %arg2: memref<1x8x16xf32, #tpu.memory_space<vmem>>, %arg3: memref<16x16xf32, #tpu.memory_space<vmem>>, %arg4: memref<16x16xf32, #tpu.memory_space<vmem>>, %arg5: memref<16x16xf32, #tpu.memory_space<vmem>>, %arg6: memref<1x8x16xf32, #tpu.memory_space<vmem>>, %arg7: memref<8x16xf32, #tpu.memory_space<vmem>>) attributes {dimension_semantics = [#tpu.dimension_semantics<arbitrary>], iteration_bounds = array<i64: 3>, scalar_prefetch = 0 : i64, scratch_operands = 1 : i64, tpu.core_type = #tpu.core_type<tc>, window_params = [{pipeline_mode = #tpu.pipeline_mode<synchronous>, transform_indices = @transform_0, window_bounds = array<i64: 8, 16>}, {transform_indices = @transform_1, window_bounds = array<i64: 1, 8, 16>}, {pipeline_mode = #tpu.pipeline_mode<synchronous>, transform_indices = @transform_2, window_bounds = array<i64: 16, 16>}, {pipeline_mode = #tpu.pipeline_mode<synchronous>, transform_indices = @transform_3, window_bounds = array<i64: 16, 16>}, {pipeline_mode = #tpu.pipeline_mode<synchronous>, transform_indices = @transform_4, window_bounds = array<i64: 16, 16>}, {transform_indices = @transform_5, window_bounds = array<i64: 1, 8, 16>}]} {
    %c0_i32 = arith.constant 0 : i32
    %0 = arith.cmpi eq, %arg0, %c0_i32 : i32
    %1 = arith.extui %0 : i1 to i32
    %c0_i32_0 = arith.constant 0 : i32
    %2 = arith.cmpi ne, %1, %c0_i32_0 : i32
    scf.if %2 {
      %c0_23 = arith.constant 0 : index
      %c0_24 = arith.constant 0 : index
      %33 = vector.load %arg1[%c0_23, %c0_24] : memref<8x16xf32, #tpu.memory_space<vmem>>, vector<8x16xf32>
      %c0_25 = arith.constant 0 : index
      %c0_26 = arith.constant 0 : index
      %34 = vector.load %arg7[%c0_25, %c0_26] : memref<8x16xf32, #tpu.memory_space<vmem>>, vector<8x16xf32>
      tpu.vector_store %arg7[%c0_25, %c0_26], %33 {strides = array<i32>} : memref<8x16xf32, #tpu.memory_space<vmem>>, vector<8x16xf32>,
    } else {
    }
    %c0 = arith.constant 0 : index
    %c0_1 = arith.constant 0 : index
    %3 = vector.load %arg7[%c0, %c0_1] : memref<8x16xf32, #tpu.memory_space<vmem>>, vector<8x16xf32>
    %c0_2 = arith.constant 0 : index
    %c0_3 = arith.constant 0 : index
    %c0_4 = arith.constant 0 : index
    %4 = vector.load %arg2[%c0_2, %c0_3, %c0_4] : memref<1x8x16xf32, #tpu.memory_space<vmem>>, vector<1x8x16xf32>
    %5 = vector.shape_cast %4 : vector<1x8x16xf32> to vector<8x16xf32>
    %c0_5 = arith.constant 0 : index
    %c0_6 = arith.constant 0 : index
    %6 = vector.load %arg3[%c0_5, %c0_6] : memref<16x16xf32, #tpu.memory_space<vmem>>, vector<16x16xf32>
    %cst = arith.constant dense<0.000000e+00> : vector<8x16xf32>
    %7 = tpu.matmul %3, %6, %cst {dimension_numbers = #tpu.dot_dimension_numbers<[1], [0], [0], [1], [0, 0, 1, 1], [], []>} : vector<8x16xf32>, vector<16x16xf32>, vector<8x16xf32> -> vector<8x16xf32>
    %c0_7 = arith.constant 0 : index
    %c0_8 = arith.constant 0 : index
    %8 = vector.load %arg4[%c0_7, %c0_8] : memref<16x16xf32, #tpu.memory_space<vmem>>, vector<16x16xf32>
    %cst_9 = arith.constant dense<0.000000e+00> : vector<8x16xf32>
    %9 = tpu.matmul %5, %8, %cst_9 {dimension_numbers = #tpu.dot_dimension_numbers<[1], [0], [0], [1], [0, 0, 1, 1], [], []>} : vector<8x16xf32>, vector<16x16xf32>, vector<8x16xf32> -> vector<8x16xf32>
    %c0_10 = arith.constant 0 : index
    %c0_11 = arith.constant 0 : index
    %10 = vector.load %arg5[%c0_10, %c0_11] : memref<16x16xf32, #tpu.memory_space<vmem>>, vector<16x16xf32>
    %cst_12 = arith.constant dense<0.000000e+00> : vector<8x16xf32>
    %11 = tpu.matmul %5, %10, %cst_12 {dimension_numbers = #tpu.dot_dimension_numbers<[1], [0], [0], [1], [0, 0, 1, 1], [], []>} : vector<8x16xf32>, vector<16x16xf32>, vector<8x16xf32> -> vector<8x16xf32>
    %cst_13 = arith.constant dense<0.000000e+00> : vector<8x8xf32>
    %12 = tpu.matmul %7, %9, %cst_13 {dimension_numbers = #tpu.dot_dimension_numbers<[1], [1], [0], [0], [0, 0, 1, 0], [], []>} : vector<8x16xf32>, vector<8x16xf32>, vector<8x8xf32> -> vector<8x8xf32>
    %cst_14 = arith.constant 1.600000e+01 : f32
    %13 = math.sqrt %cst_14 : f32
    %14 = vector.broadcast %13 : f32 to vector<8x8xf32>
    %15 = arith.divf %12, %14 : vector<8x8xf32>
    %cst_15 = arith.constant dense<0xFF800000> : vector<8xf32>
    %16 = vector.multi_reduction <maximumf>, %15, %cst_15 [1] : vector<8x8xf32> to vector<8xf32>
    %17 = vector.shape_cast %16 : vector<8xf32> to vector<8x1xf32>
    %18 = vector.broadcast %17 : vector<8x1xf32> to vector<8x8xf32>
    %19 = arith.subf %15, %18 : vector<8x8xf32>
    %20 = math.exp %19 : vector<8x8xf32>
    %cst_16 = arith.constant dense<0.000000e+00> : vector<8xf32>
    %21 = vector.multi_reduction <add>, %20, %cst_16 [1] : vector<8x8xf32> to vector<8xf32>
    %22 = vector.shape_cast %21 : vector<8xf32> to vector<8x1xf32>
    %23 = tpu.reciprocal %22 {approx = true} : vector<8x1xf32> -> vector<8x1xf32>
    %24 = vector.broadcast %23 : vector<8x1xf32> to vector<8x8xf32>
    %25 = arith.mulf %20, %24 : vector<8x8xf32>
    %cst_17 = arith.constant dense<0.000000e+00> : vector<8x16xf32>
    %26 = tpu.matmul %25, %11, %cst_17 {dimension_numbers = #tpu.dot_dimension_numbers<[1], [0], [0], [1], [0, 0, 1, 1], [], []>} : vector<8x8xf32>, vector<8x16xf32>, vector<8x16xf32> -> vector<8x16xf32>
    %27 = arith.addf %3, %26 : vector<8x16xf32>
    %28 = math.tanh %27 : vector<8x16xf32>
    %c0_18 = arith.constant 0 : index
    %c0_19 = arith.constant 0 : index
    %29 = vector.load %arg7[%c0_18, %c0_19] : memref<8x16xf32, #tpu.memory_space<vmem>>, vector<8x16xf32>
    tpu.vector_store %arg7[%c0_18, %c0_19], %28 {strides = array<i32>} : memref<8x16xf32, #tpu.memory_space<vmem>>, vector<8x16xf32>,
    %c0_20 = arith.constant 0 : index
    %c0_21 = arith.constant 0 : index
    %c0_22 = arith.constant 0 : index
    %30 = vector.load %arg6[%c0_20, %c0_21, %c0_22] : memref<1x8x16xf32, #tpu.memory_space<vmem>>, vector<1x8x16xf32>
    %31 = vector.shape_cast %30 : vector<1x8x16xf32> to vector<8x16xf32>
    %32 = vector.shape_cast %28 : vector<8x16xf32> to vector<1x8x16xf32>
    tpu.vector_store %arg6[%c0_20, %c0_21, %c0_22], %32 {strides = array<i32>} : memref<1x8x16xf32, #tpu.memory_space<vmem>>, vector<1x8x16xf32>,
    return
  }
  func.func @transform_0(%arg0: i32) -> (i32, i32) {
    %c0_i32 = arith.constant 0 : i32
    %c0_i32_0 = arith.constant 0 : i32
    %c0_i32_1 = arith.constant 0 : i32
    return %c0_i32, %c0_i32_0 : i32, i32
  }
  func.func @transform_1(%arg0: i32) -> (i32, i32, i32) {
    %c0_i32 = arith.constant 0 : i32
    %c0_i32_0 = arith.constant 0 : i32
    %c0_i32_1 = arith.constant 0 : i32
    return %arg0, %c0_i32, %c0_i32_0 : i32, i32, i32
  }
  func.func @transform_2(%arg0: i32) -> (i32, i32) {
    %c0_i32 = arith.constant 0 : i32
    %c0_i32_0 = arith.constant 0 : i32
    %c0_i32_1 = arith.constant 0 : i32
    return %c0_i32, %c0_i32_0 : i32, i32
  }
  func.func @transform_3(%arg0: i32) -> (i32, i32) {
    %c0_i32 = arith.constant 0 : i32
    %c0_i32_0 = arith.constant 0 : i32
    %c0_i32_1 = arith.constant 0 : i32
    return %c0_i32, %c0_i32_0 : i32, i32
  }
  func.func @transform_4(%arg0: i32) -> (i32, i32) {
    %c0_i32 = arith.constant 0 : i32
    %c0_i32_0 = arith.constant 0 : i32
    %c0_i32_1 = arith.constant 0 : i32
    return %c0_i32, %c0_i32_0 : i32, i32
  }
  func.func @transform_5(%arg0: i32) -> (i32, i32, i32) {
    %c0_i32 = arith.constant 0 : i32
    %c0_i32_0 = arith.constant 0 : i32
    %c0_i32_1 = arith.constant 0 : i32
    return %arg0, %c0_i32, %c0_i32_0 : i32, i32, i32
  }
}

</mosaic_0001>

<bundles_post_ra>
// kernel: tpu_custom_call.1
= control target key start
LH: loop header
LB: loop body
LE: loop exit
PB: predicated region body
PF: predicated region fallthrough
CT: control target
= control target key end

     0   :  { %10 = vsyncpa [#allocation4], 0  ;;  %s1577_s0 = inlined_call_operand.hbm [shape: f32[8,16], index: 0, kind: input, shape index: {}]   ;;  %s1578_s1 = inlined_call_operand.hbm [shape: f32[3,8,16], index: 1, kind: input, shape index: {}]   ;;  %s1579_s2 = inlined_call_operand.hbm [shape: f32[16,16], index: 2, kind: input, shape index: {}]   ;;  %s1580_s3 = inlined_call_operand.hbm [shape: f32[16,16], index: 3, kind: input, shape index: {}]   ;;  %s1581_s4 = inlined_call_operand.hbm [shape: f32[16,16], index: 4, kind: input, shape index: {}]   ;;  %s1582_s5 = inlined_call_operand.hbm [shape: f32[3,8,16], index: 5, kind: output, shape index: {}]  }
   0x1   :  { %11 = vsyncpa [#allocation7], 0 }
   0x2   :  { %13 = vsyncpa [#allocation7 + $0x1], 0 }
   0x3   :  { %14 = vsyncpa [#allocation10], 0 }
   0x4   :  { %15 = vsyncpa [#allocation5], 0 }
   0x5   :  { %17 = vsyncpa [#allocation5 + $0x1], 0  ;;  %s1260_s18 = smov 0   ;;  %s1262_s19 = smov 0  }
   0x6   :  { %s1264_s20 = smov 0   ;;  %s1266_s21 = smov 0  }
   0x7 LB: > { %s1219_s22 = smov [#allocation8]   ;;  %s1281_s24 = sadd.s32 4294967295, %s1217_s21   ;;  %s1217_s21 = sphi %s1266_s21, %s1608_s21   ;;  %s1213_s20 = sphi %s1264_s20, %s1607_s20   ;;  %s1209_s19 = sphi %s1262_s19, %s1606_s19   ;;  %s1205_s18 = sphi %s1260_s18, %s1605_s18  }
   0x8   : > { %s187_s23 = sshll.u32 %s1219_s22, 4  ;;  %p820_p0 = scmp.ge.s32.totalorder %s1217_s21, 1  ;;  %s1288_s23 = int_to_ptr.vmem [resolvable:$true] %s187_s23 }
   0x9   : > { %p1583_p1 = scmp.eq.s32.totalorder %s1281_s24, 0  ;;  %p164_p3 = scmp.lt.s32.totalorder %s1217_s21, 4 }
   0xa   : > { %s1220_s26 = smov [#allocation9]   ;;  %s1221_s29 = smov [#allocation3]  }
   0xb   : > { %p1290_p5 = pnand %p820_p0, %p164_p3  ;;  %s200_s27 = sshll.u32 %s1220_s26, 4  ;;  %s1296_s27 = int_to_ptr.vmem [resolvable:$true] %s200_s27 }
   0xc   : > { %s177_s30 = sshll.u32 %s1221_s29, 4  ;;  %s1222_s6 = smov [#allocation11]   ;;  %s1304_s30 = int_to_ptr.vmem [resolvable:$true] %s177_s30 }
   0xd   : > { %s1586_s25 = scalar_select %p1290_p5, 1, 0 }
   0xe   : > { %p919_p6 = pneg %p1290_p5  ;;  %s1306_s7 = sshll.u32 %s1222_s6, 4  ;;  %s214_s7 = int_to_ptr.vmem [resolvable:$true] %s1306_s7 }
   0xf   : > { %s997_s10 = scalar_lea.hbm %s1579_s2, 256 }
  0x10   : > { %p1300_p7 = pnand %p919_p6, %p1583_p1  ;;  %p998_p8 = scmp.ne.s32.totalorder %s1579_s2, %s997_s10 }
  0x11   : > { %p1004_p12 = scmp.lt.u32.totalorder %s997_s10, %s1579_s2 }
  0x12   : > { %p1316_p9 = pneg %p1300_p7 }
  0x14   : > { %p1000_p10 = pnand %p1316_p9, %p998_p8 }
  0x16   : > { %p1001_p11 = pneg %p1000_p10 }
  0x18   : > { %p1006_p13 = pnand %p1004_p12, %p1001_p11 }
  0x1a   : > { %1009 = shalt.err (!%p1006_p13)
}
  0x1b   : > { %s1010_s16 = scalar_lea.vmem %s1288_s23, 256  ;;  %p1018_p4 = scmp.lt.s32.totalorder %s1288_s23, %s1288_s23 }
  0x1c   : > { %p1011_p0 = scmp.ne.s32.totalorder %s1288_s23, %s1010_s16  ;;  %p1019_p1 = scmp.lt.s32.totalorder %s1010_s16, %s1010_s16 }
  0x1e   : > { %p1013_p3 = pnand %p1011_p0, %p1316_p9  ;;  %p1020_p8 = por %p1019_p1, %p1018_p4 }
  0x20   : > { %p1014_p6 = pneg %p1013_p3 }
  0x22   : > { %p1021_p10 = pnand %p1020_p8, %p1014_p6 }
  0x24   : > { %1024 = shalt.err (!%p1021_p10)
}
  0x25   : > { %s1223_s17 = smov 128   ;;  %s1224_s22 = smov 8  }
  0x26   : > { %925 = dma.hbm_to_vmem [thread:$0]  (!%p1300_p7), %s1579_s2, 256, %s1288_s23, [#allocation7], %s1223_s17, %s1223_s17, %s1224_s22  }
  0x27   : > { %s1025_s9 = scalar_lea.hbm %s1580_s3, 256 }
  0x28   : > { %p1026_p1 = scmp.ne.s32.totalorder %s1580_s3, %s1025_s9  ;;  %p1032_p12 = scmp.lt.u32.totalorder %s1025_s9, %s1580_s3 }
  0x2a   : > { %p1028_p4 = pnand %p1026_p1, %p1316_p9 }
  0x2c   : > { %p1029_p11 = pneg %p1028_p4 }
  0x2e   : > { %p1034_p13 = pnand %p1032_p12, %p1029_p11 }
  0x30   : > { %1037 = shalt.err (!%p1034_p13)
}
  0x31   : > { %s1038_s23 = scalar_lea.vmem %s1296_s27, 256  ;;  %p1046_p8 = scmp.lt.s32.totalorder %s1296_s27, %s1296_s27 }
  0x32   : > { %p1039_p0 = scmp.ne.s32.totalorder %s1296_s27, %s1038_s23  ;;  %p1047_p10 = scmp.lt.s32.totalorder %s1038_s23, %s1038_s23 }
  0x34   : > { %p1041_p3 = pnand %p1039_p0, %p1316_p9  ;;  %p1048_p1 = por %p1047_p10, %p1046_p8 }
  0x36   : > { %p1042_p6 = pneg %p1041_p3 }
  0x38   : > { %p1049_p4 = pnand %p1048_p1, %p1042_p6 }
  0x3a   : > { %1052 = shalt.err (!%p1049_p4)
}
  0x3b   : > { %928 = dma.hbm_to_vmem [thread:$0]  (!%p1300_p7), %s1580_s3, 256, %s1296_s27, [#allocation10], %s1223_s17, %s1223_s17, %s1224_s22  }
  0x3c   : > { %s1053_s6 = scalar_lea.hbm %s1577_s0, 128 }
  0x3d   : > { %p1054_p11 = scmp.ne.s32.totalorder %s1577_s0, %s1053_s6  ;;  %p1060_p0 = scmp.lt.u32.totalorder %s1053_s6, %s1577_s0 }
  0x3f   : > { %p1056_p12 = pnand %p1054_p11, %p1316_p9 }
  0x41   : > { %p1057_p13 = pneg %p1056_p12 }
  0x43   : > { %p1062_p3 = pnand %p1060_p0, %p1057_p13 }
  0x45   : > { %1065 = shalt.err (!%p1062_p3)
}
  0x46   : > { %s1066_s27 = scalar_lea.vmem %s1304_s30, 128  ;;  %p1074_p1 = scmp.lt.s32.totalorder %s1304_s30, %s1304_s30 }
  0x47   : > { %p1067_p6 = scmp.ne.s32.totalorder %s1304_s30, %s1066_s27  ;;  %p1075_p4 = scmp.lt.s32.totalorder %s1066_s27, %s1066_s27 }
  0x49   : > { %p1069_p8 = pnand %p1067_p6, %p1316_p9  ;;  %p1076_p11 = por %p1075_p4, %p1074_p1 }
  0x4b   : > { %p1070_p10 = pneg %p1069_p8 }
  0x4d   : > { %p1077_p12 = pnand %p1076_p11, %p1070_p10 }
  0x4f   : > { %1080 = shalt.err (!%p1077_p12)
}
  0x50   : > { %922 = dma.hbm_to_vmem [thread:$0]  (!%p1300_p7), %s1577_s0, 128, %s1304_s30, [#allocation4]  }
  0x51   : > { %s1081_s16 = scalar_lea.hbm %s1581_s4, 256 }
  0x52   : > { %p1082_p13 = scmp.ne.s32.totalorder %s1581_s4, %s1081_s16  ;;  %p1088_p6 = scmp.lt.u32.totalorder %s1081_s16, %s1581_s4 }
  0x54   : > { %p1084_p0 = pnand %p1082_p13, %p1316_p9 }
  0x56   : > { %p1085_p3 = pneg %p1084_p0 }
  0x58   : > { %p1090_p8 = pnand %p1088_p6, %p1085_p3 }
  0x5a   : > { %1093 = shalt.err (!%p1090_p8)
}
  0x5b   : > { %s1094_s9 = scalar_lea.vmem %s214_s7, 256  ;;  %p1102_p11 = scmp.lt.s32.totalorder %s214_s7, %s214_s7 }
  0x5c   : > { %p1095_p10 = scmp.ne.s32.totalorder %s214_s7, %s1094_s9  ;;  %p1103_p12 = scmp.lt.s32.totalorder %s1094_s9, %s1094_s9 }
  0x5e   : > { %p1097_p1 = pnand %p1095_p10, %p1316_p9  ;;  %p1104_p2 = por %p1103_p12, %p1102_p11 }
  0x60   : > { %p1098_p4 = pneg %p1097_p1 }
  0x62   : > { %p1105_p5 = pnand %p1104_p2, %p1098_p4 }
  0x64   : > { %1108 = shalt.err (!%p1105_p5)
}
  0x65   : > { %931 = dma.hbm_to_vmem [thread:$0]  (!%p1300_p7), %s1581_s4, 256, %s214_s7, [#allocation10], %s1223_s17, %s1223_s17, %s1224_s22  }
  0x66   : > { %s819_s28 = sadd.s32 4294967294, %s1217_s21   ;;  %s1413_s13 = sadd.s32 1, %s1217_s21  }
  0x67   : > { %s51_s11 = sadd.s32 1, %s1213_s20  ;;  %s48_s27 = ssub.s32 %s1217_s21, %s1413_s13 }
  0x68   : > { %p58_p2 = scmp.ne.s32.totalorder %s1213_s20, %s1209_s19  ;;  %p49_p5 = scmp.eq.s32.totalorder %s48_s27, 0 }
  0x69   : > { %p59_p9 = scmp.eq.s32.totalorder %s1217_s21, 0  ;;  %p64_p13 = scmp.ne.s32.totalorder %s1209_s19, %s1205_s18 }
  0x6a   : > { %p1589_p0 = scmp.eq.s32.totalorder %s1281_s24, 2  ;;  %p1591_p6 = scmp.eq.s32.totalorder %s1281_s24, 0 }
  0x6b   : > { %s1430_s14 = scalar_select %p49_p5, %s1213_s20, %s51_s11  }
  0x6c   : > { %p1425_p3 = por %p1589_p0, %p58_p2  ;;  %p60_p7 = por %p59_p9, %p58_p2 }
  0x6d   : > { %p1434_p8 = por %p1591_p6, %p64_p13  ;;  %p157_p10 = scmp.eq.s32.totalorder %s819_s28, 2 }
  0x6e   : > { %s1590_s12 = scalar_select %p1425_p3, 1, 0 }
  0x6f   : > { %p944_p1 = scmp.lt.s32.totalorder %s1217_s21, 3  ;;  %s227_s17 = sand.u32 1, %s1217_s21  }
  0x70   : > { %s229_s22 = sand.u32 1, %s1213_s20   ;;  %p1441_p4 = por %p157_p10, %p64_p13 }
  0x71   : > { %s826_s15 = sshll.u32 %s229_s22, 3  ;;  %s827_s16 = sshll.u32 %s1217_s21, 7 }
  0x72   : > { %s1593_s23 = scalar_select %p1441_p4, 1, 0 }
  0x73   : > { %s1449_s6 = scalar_lea.hbm %s1578_s1, %s827_s16  ;;  %s231_s8 = scalar_lea.vmem [#allocation6], %s826_s15 }
  0x74   : > { %s238_s9 = sshll.u32 %s231_s8, 4  ;;  %p1451_p11 = pnand %p944_p1, %p60_p7  ;;  %s1455_s9 = int_to_ptr.vmem [resolvable:$true] %s238_s9 }
  0x75   : > { %s228_s10 = scalar_lea.sflag [#allocation7], %s227_s17  ;;  %s1109_s28 = scalar_lea.hbm %s1449_s6, 128 }
  0x76   : > { %p1110_p12 = scmp.ne.s32.totalorder %s1449_s6, %s1109_s28  ;;  %p1111_p2 = pneg %p1451_p11 }
  0x77   : > { %s1114_s22 = scalar_lea.hbm %s1578_s1, 384  ;;  %p1115_p13 = scmp.lt.u32.totalorder %s1449_s6, %s1578_s1 }
  0x78   : > { %p1112_p5 = pnand %p1111_p2, %p1110_p12  ;;  %p1116_p0 = scmp.lt.u32.totalorder %s1114_s22, %s1109_s28 }
  0x79   : > { %p1118_p6 = scmp.lt.u32.totalorder %s1109_s28, %s1449_s6 }
  0x7a   : > { %p1113_p9 = pneg %p1112_p5  ;;  %p1117_p7 = por %p1116_p0, %p1115_p13 }
  0x7c   : > { %p1119_p10 = por %p1118_p6, %p1117_p7 }
  0x7e   : > { %p1120_p1 = pnand %p1119_p10, %p1113_p9 }
  0x80   : > { %1123 = shalt.err (!%p1120_p1)
}
  0x81   : > { %s1124_s17 = scalar_lea.vmem %s1455_s9, 128  ;;  %s1225_s26 = smov [#allocation6]  }
  0x82   : > { %p1125_p12 = scmp.ne.s32.totalorder %s1455_s9, %s1124_s17  ;;  %s1129_s29 = sshll.u32 %s1225_s26, 4  ;;  %s1130_s29 = int_to_ptr.vmem [resolvable:$false] %s1129_s29 }
  0x83   : > { %s1131_s8 = scalar_lea.vmem %s1130_s29, 256  ;;  %p1132_p3 = scmp.lt.s32.totalorder %s1455_s9, %s1130_s29 }
  0x84   : > { %p1127_p5 = pnand %p1125_p12, %p1111_p2  ;;  %p1133_p13 = scmp.lt.s32.totalorder %s1131_s8, %s1124_s17 }
  0x86   : > { %p1128_p4 = pneg %p1127_p5  ;;  %p1134_p0 = por %p1133_p13, %p1132_p3 }
  0x88   : > { %p1135_p7 = pnand %p1134_p0, %p1128_p4 }
  0x8a   : > { %1138 = shalt.err (!%p1135_p7)
}
  0x8b   : > { %935 = dma.hbm_to_vmem [thread:$0]  (!%p1451_p11), %s1449_s6, 128, %s1455_s9, %s228_s10  }
  0x8c   : > { %p1595_p9 = scmp.ne.s32.totalorder %s1586_s25, 0 }
  0x8d   : > { %p1596_p2 = scmp.eq.s32.totalorder (!%p1595_p9), %s1281_s24, 0 }
  0x8e   : > { %247 = sbr.rel (%p1595_p9) target bundleno = 1157 (0x485), region = 40 }
  0x95   : > { %1184 = dma.done.wait (%p1596_p2), [#allocation4], 128   ;;  %p1597_p6 = pmov %p1596_p2 }
  0x96   : > { %s253_s28 = sand.u32 1, %s1281_s24   ;;  %s255_s11 = sand.u32 1, %s1209_s19  }
  0x97   : > { %1186 = vsyncadd (%p1597_p6), [#allocation4], 4294967168  ;;  %s1492_s30 = sshll.u32 %s255_s11, 3  ;;  %s254_s6 = scalar_lea.sflag [#allocation7], %s253_s28 }
  0x98   : > { %s257_s9 = scalar_lea.vmem [#allocation6], %s1492_s30 }
  0x99   : > { %1188 = dma.done.wait (%p1434_p8), %s254_s6, 128  }
  0x9a   : > { %1190 = vsyncadd (%p1434_p8), %s254_s6, 4294967168  ;;  %p1598_p3 = pmov %p1596_p2 }
  0x9b   : > { %p1599_p4 = pmov %p1596_p2 }
  0x9c   : > { %1192 = dma.done.wait (%p1598_p3), [#allocation7], 256  }
  0x9d   : > { %1194 = vsyncadd (%p1599_p4), [#allocation7], 4294967040  ;;  %p1600_p11 = pmov %p1596_p2 }
  0x9e   : > { %p1601_p10 = pmov %p1596_p2 }
  0x9f   : > { %1196 = dma.done.wait (%p1600_p11), [#allocation10], 512  }
  0xa0   : > { %1198 = vsyncadd (%p1601_p10), [#allocation10], 4294966784  ;;  %s295_s25 = scalar_lea.vmem [#allocation12], %s1492_s30  ;;  %p1602_p1 = scmp.ne.s32.totalorder %s1281_s24, 0 }
  0xa1   : > { %v300_v0 = vld [vmem:[#allocation3] sm:$0xff] (!%p1602_p1)  ;;  %vm301_vm0 = vcmask (!%p1602_p1), 130048  }
  0xa2   : > { %299 = sbr.rel (%p1602_p1) target bundleno = 169 (0xa9), region = 64  ;;  %302 = vst.msk [vmem:[#allocation2] sm:$0xff] (!%p1602_p1), %vm301_vm0, %v300_v0 }
  0xa9 PF: > { %v381_v1 = vld [vmem:[#allocation9] sm:$0xff]  ;;  %v382_v2 = vld [vmem:[#allocation9 + $0x8] sm:$0xff]  ;;  %v305_v3 = vld [vmem:[#allocation8] sm:$0xff]  ;;  %v1226_v4 = vmov 0.0|0.0   ;;  %vm1227_vm1 = vmmov 0   ;;  %v1228_v7 = vmov 0.0  }
  0xaa   : > { %893 = vmatprep.subr.bf16.mxu1 %v1226_v4  ;;  %v894_v5 = vpack.c.bf16 %v382_v2, %v381_v1  ;;  %890 = vmatprep.subr.bf16.mxu0 %v1226_v4  ;;  %v306_v6 = vld [vmem:[#allocation8 + $0x8] sm:$0xff]  ;;  %v304_v9 = vld [vmem:[%s257_s9] sm:$0xff]  ;;  %vm307_vm2 = vcmask 130048   ;;  %v303_v10 = vld [vmem:[#allocation2] sm:$0xff]  ;;  %vm606_vm3 = vcmask 64512   ;;  %s843_s7 = sshll.u32 %s1281_s24, 7 }
  0xab   : > { %870 = vmatprep.mubr.msk.f32.mxu1 %vm1227_vm1, %v1228_v7  ;;  %v891_v8 = vpack.c.bf16 %v306_v6, %v305_v3  ;;  %863 = vmatprep.mubr.msk.f32.mxu0 %vm1227_vm1, %v1228_v7  ;;  %v456_v15 = vld [vmem:[#allocation11] sm:$0xff]  ;;  %v457_v16 = vld [vmem:[#allocation11 + $0x8] sm:$0xff]  ;;  %s709_s10 = sshll.u32 %s295_s25, 4  ;;  %s1529_s15 = scalar_lea.hbm %s1582_s5, %s843_s7  ;;  %s1531_s10 = int_to_ptr.vmem [resolvable:$true] %s709_s10 }
  0xac   : > { %895 = vmatpush3.bf16.msra.mxu1 %v894_v5  ;;  %v897_v17 = vpack.c.bf16 %v457_v16, %v456_v15  ;;  %s696_s24 = scalar_lea.sflag [#allocation5], %s255_s11  ;;  %s1139_s16 = scalar_lea.vmem %s1531_s10, 128 }
  0xad   : > { %892 = vmatpush3.bf16.msra.mxu0 %v891_v8  ;;  %880 = vmatprep.subr.mxu1 %v1228_v7  ;;  %p1140_p8 = scmp.ne.s32.totalorder %s1531_s10, %s1139_s16  ;;  %p1603_p12 = scmp.ne.s32.totalorder %s1590_s12, 0 }
  0xae   : > { %896 = vmatprep.subr.bf16.mxu0 %v1226_v4  ;;  %s1229_s17 = smov [#allocation12]  }
  0xaf   : > { %871 = vmatmul.mubr.msk.f32.vlgmr.msra.gmra.mrb[0].mxu1 %vm307_vm2, %v304_v9  ;;  %p1141_p5 = pnand %p1140_p8, %p1603_p12  ;;  %s1143_s26 = sshll.u32 %s1229_s17, 4  ;;  %s1144_s26 = int_to_ptr.vmem [resolvable:$false] %s1143_s26 }
  0xb0   : > { %864 = vmatmul.mubr.msk.f32.vlgmr.msra.gmra.mrb[0].mxu0 %vm307_vm2, %v303_v10  ;;  %882 = vmatprep.mubr.msk.f32.mxu1 %vm1227_vm1, %v1228_v7  ;;  %s1145_s29 = scalar_lea.vmem %s1144_s26, 256  ;;  %p1146_p0 = scmp.lt.s32.totalorder %s1531_s10, %s1144_s26 }
  0xb1   : > { %877 = vmatprep.mubr.msk.f32.mxu0 %vm1227_vm1, %v1228_v7  ;;  %898 = vmatpush3.bf16.msra.mxu0 %v897_v17  ;;  %p1142_p13 = pneg %p1141_p5  ;;  %p1147_p7 = scmp.lt.s32.totalorder %s1145_s29, %s1139_s16 }
  0xb2   : > { %885 = vmatprep.subr.mxu0 %v1228_v7 }
  0xb3   : > { %p1148_p9 = por %p1147_p7, %p1146_p0 }
  0xb4   : > { %878 = vmatmul.mubr.msk.f32.vlgmr.msra.gmra.mrb[2].mxu0 %vm307_vm2, %v304_v9 }
  0xb5   : > { %887 = vmatprep.mubr.msk.f32.mxu0 %vm1227_vm1, %v1228_v7  ;;  %p1149_p2 = pnand %p1148_p9, %p1142_p13 }
 0x182   : > { %v452_v11 = vpop.f32.mrb[0].mxu1 }
 0x183   : > { %v872_v12 = vpop.f32.mrb[1].mxu1  ;;  %881 = vmatpush3.xpose.msk.msra.mxu1 %vm307_vm2, %v452_v11  ;;  %v377_v13 = vpop.f32.mrb[0].mxu0 }
 0x184   : > { %v865_v14 = vpop.f32.mrb[1].mxu0 }
 0x186   : > { %883 = vmatmul.mubr.msk.f32.vlgmr.msra.gmra.mrb[2].mxu1 %vm307_vm2, %v377_v13 }
 0x187   : > { %v524_v27 = vpop.f32.mrb[2].mxu0 }
 0x188   : > { %v879_v28 = vpop.f32.mrb[3].mxu0  ;;  %886 = vmatpush3.msra.mxu0 %v524_v27 }
 0x259   : > { %v600_v18 = vpop.f32.mrb[2].mxu1 }
 0x25a   : > { %v605_v19 = vmul.f32 0.25, %v600_v18  ;;  %v884_v20 = vpop.f32.mrb[3].mxu1 }
 0x25c   : > { %v607_v21 = vsel %vm606_vm3, %v605_v19, -inf }
 0x25d   : > { %608 = vmax.xlane.f32.xlu0 %v607_v21 }
 0x2ea   : > { %v609_v22 = vpop.xlane.xlu0 %608 }
 0x2eb   : > { %v610_v23 = vsub.f32 %v605_v19, %v609_v22 }
 0x2ed   : > { %v611_v24 = vmul.f32 1.442695, %v610_v23 }
 0x2ef   : > { %991 = vpow2.f32 %v611_v24 }
 0x2f9   : > { %v992_v25 = vpop.eup %991 }
 0x2fa   : > { %v613_v26 = vsel %vm606_vm3, %v992_v25, 0.0 }
 0x2fb   : > { %614 = vadd.xlane.f32.xlu0 %v613_v26 }
 0x388   : > { %v615_v29 = vpop.xlane.xlu0 %614 }
 0x389   : > { %993 = vrcp.f32 %v615_v29 }
 0x393   : > { %v994_v30 = vpop.eup %993 }
 0x394   : > { %v617_v31 = vmul.f32 %v994_v30, %v992_v25 }
 0x396   : > { %888 = vmatmul.mubr.msk.f32.vlgmr.msra.gmra.mrb[4].mxu0 %vm606_vm3, %v617_v31 }
 0x469   : > { %v687_v32 = vpop.f32.mrb[4].mxu0 }
 0x46a   : > { %v691_v33 = vadd.f32 %v687_v32, %v303_v10  ;;  %v889_v34 = vpop.f32.mrb[5].mxu0 }
 0x46c   : > { %995 = vtanh.f32 %v691_v33 }
 0x476   : > { %v996_v35 = vpop.eup %995 }
 0x477   : > { %693 = vst.msk [vmem:[#allocation2] sm:$0xff] %vm307_vm2, %v996_v35  ;;  %694 = vst.msk [vmem:[%s295_s25] sm:$0xff] %vm307_vm2, %v996_v35 }
 0x478   : > { %1152 = shalt.err (!%p1149_p2)
}
 0x479   : > { %s1153_s8 = scalar_lea.hbm %s1529_s15, 128  ;;  %s1157_s30 = scalar_lea.hbm %s1582_s5, 384 }
 0x47a   : > { %p1154_p6 = scmp.ne.s32.totalorder %s1529_s15, %s1153_s8  ;;  %p1158_p11 = scmp.lt.u32.totalorder %s1529_s15, %s1582_s5 }
 0x47b   : > { %p1159_p10 = scmp.lt.u32.totalorder %s1157_s30, %s1153_s8  ;;  %p1161_p8 = scmp.lt.u32.totalorder %s1153_s8, %s1529_s15 }
 0x47c   : > { %p1155_p3 = pnand %p1154_p6, %p1603_p12 }
 0x47d   : > { %p1160_p1 = por %p1159_p10, %p1158_p11 }
 0x47e   : > { %p1156_p4 = pneg %p1155_p3 }
 0x47f   : > { %p1162_p5 = por %p1161_p8, %p1160_p1 }
 0x481   : > { %p1163_p13 = pnand %p1162_p5, %p1156_p4 }
 0x483   : > { %1166 = shalt.err (!%p1163_p13)
}
 0x484   : > { %917 = dma.vmem_to_hbm [thread:$0]  (%p1603_p12), %s1531_s10, 128, %s1529_s15, %s696_s24  }
 0x485 PF: > { %p949_p0 = scmp.ge.s32.totalorder %s1217_s21, 2  ;;  %s721_s25 = sand.u32 1, %s1205_s18  }
 0x486   : > { %p1604_p7 = scmp.ne.s32.totalorder %s1593_s23, 0  ;;  %s722_s7 = scalar_lea.sflag [#allocation5], %s721_s25 }
 0x488   : > { %p937_p9 = pnand %p949_p0, %p1604_p7 }
 0x48a   : > { %1200 = dma.done.wait (!%p937_p9), %s722_s7, 128  }
 0x48b   : > { %1202 = vsyncadd (!%p937_p9), %s722_s7, 4294967168  ;;  %p20_p2 = scmp.ge.s32.totalorder %s1413_s13, 5   ;;  %s1605_s18 = smov %s1209_s19 }
 0x48c   : > { %s1606_s19 = smov %s1213_s20  ;;  %s1607_s20 = smov %s1430_s14 }
 0x48d   : > { %s1608_s21 = smov %s1413_s13  ;;  %22 = sbr.rel (!%p20_p2) target bundleno = 7 (0x7), region = 106 }
 0x494   :  { %727 = vsyncpa [#allocation4], 1 }
 0x495   :  { %729 = vsyncpa [#allocation4 + $0x1], 1 }
 0x496   :  { %730 = vsyncpa [#allocation7], 1 }
 0x497   :  { %732 = vsyncpa [#allocation7 + $0x1], 1 }
 0x498   :  { %733 = vsyncpa [#allocation10], 1 }
 0x499   :  { %734 = vsyncpa [#allocation5], 1 }
 0x49a   :  { %736 = vsyncpa [#allocation5 + $0x1], 1 }

</bundles_post_ra>
